<compile_context>
chip_gen: v7x
topology: tpu7x:2x2x1
jax: 0.10.0
libtpu: 0.0.40
codegen_flags: <defaults>
</compile_context>

<pallas_src>
import functools

import jax
import jax.numpy as jnp
from jax import lax
from jax.experimental import pallas as pl
from jax.experimental.pallas import tpu as pltpu


def _round_up(a, b):
    return (a + b - 1) // b * b


# ---------------------------------------------------------------------------
# Phase 1: energy accumulation over N tiles + EnergyMaxNorm softmax.
# ---------------------------------------------------------------------------
def _energy_softmax_kernel(x_ref, attn_ref, energy_acc, *, energy_dtype):
    nt = pl.program_id(1)

    @pl.when(nt == 0)
    def _init():
        energy_acc[...] = jnp.zeros_like(energy_acc)

    x = x_ref[0].astype(energy_dtype)  # (C, tn)
    # energy += x_tile @ x_tile^T (contract over the flattened-spatial axis).
    energy_acc[...] += lax.dot_general(
        x, x, (((1,), (1,)), ((), ())), preferred_element_type=jnp.float32
    )

    @pl.when(nt == pl.num_programs(1) - 1)
    def _finalize():
        e = energy_acc[...]
        # softmax(rowmax(E) - E) == softmax(-E) == exp(rowmin(E) - E) / sum(...)
        e_min = jnp.min(e, axis=-1, keepdims=True)
        p = jnp.exp(e_min - e)
        denom = jnp.sum(p, axis=-1, keepdims=True)
        attn_ref[0] = (p * pl.reciprocal(denom, approx=True)).astype(attn_ref.dtype)


# ---------------------------------------------------------------------------
# Phase 2: out = gamma * (attn @ x) + x, one N tile per grid step.
# ---------------------------------------------------------------------------
def _apply_attention_kernel(gamma_ref, attn_ref, x_ref, o_ref):
    x = x_ref[0]        # (C, tn) f32
    attn = attn_ref[0]  # (C, C), bf16 (default) or f32
    out = jnp.dot(attn, x.astype(attn.dtype), preferred_element_type=jnp.float32)
    o_ref[0] = (gamma_ref[0] * out + x).astype(o_ref.dtype)


@functools.partial(
    jax.jit,
    static_argnames=("block_n", "bf16_value_matmul", "bf16_energy_matmul"),
)
def channel_attention_module(
    x,
    gamma,
    *,
    block_n=4096,               # N-tile size; multiple of 128. Sized so phase-2 VMEM
                                # (2 in + 2 out buffers of C*tn f32 + (C,C) attn) stays
                                # well under 32 MiB for C <= 256 on v5e/v6e/v7x.
    bf16_value_matmul=True,     # bf16 operands (f32 accumulate) for attn @ x.
    bf16_energy_matmul=False,   # bf16 operands for x @ x^T (exp-amplified; opt-in).
):
    """x: (B, C, D, H, W) float32; gamma: (1,) float32."""
    B, C, D, H, W = x.shape
    N = D * H * W

    # Tile N in multiples of 128 lanes; zero-pad N up to a whole number of tiles.
    tn = _round_up(min(block_n, _round_up(N, 128)), 128)
    n_pad = _round_up(N, tn)
    n_tiles = n_pad // tn

    x_flat = x.reshape(B, C, N)
    if n_pad != N:
        # Zero columns contribute nothing to the energy; padded output columns are
        # sliced off below.
        x_flat = jnp.pad(x_flat, ((0, 0), (0, 0), (0, n_pad - N)))

    attn_dtype = jnp.bfloat16 if bf16_value_matmul else jnp.float32
    energy_dtype = jnp.bfloat16 if bf16_energy_matmul else jnp.float32

    vmem_limit = 32 * 1024 * 1024  # explicit; tiles above are sized to fit with headroom

    # --- Phase 1: attention (B, C, C) ------------------------------------------------
    attn = pl.pallas_call(
        functools.partial(_energy_softmax_kernel, energy_dtype=energy_dtype),
        out_shape=jax.ShapeDtypeStruct((B, C, C), attn_dtype),
        grid_spec=pltpu.PrefetchScalarGridSpec(
            num_scalar_prefetch=0,
            grid=(B, n_tiles),
            in_specs=[pl.BlockSpec((1, C, tn), lambda b, nt: (b, 0, nt))],
            out_specs=pl.BlockSpec((1, C, C), lambda b, nt: (b, 0, 0)),
            scratch_shapes=[pltpu.VMEM((C, C), jnp.float32)],
        ),
        compiler_params=pltpu.CompilerParams(
            dimension_semantics=("parallel", "arbitrary"),
            vmem_limit_bytes=vmem_limit,
        ),
    )(x_flat)

    # --- Phase 2: gamma * (attn @ x) + x, tiled over N --------------------------------
    out_flat = pl.pallas_call(
        _apply_attention_kernel,
        out_shape=jax.ShapeDtypeStruct((B, C, n_pad), x.dtype),
        grid_spec=pltpu.PrefetchScalarGridSpec(
            num_scalar_prefetch=0,
            grid=(B, n_tiles),
            in_specs=[
                pl.BlockSpec(memory_space=pltpu.SMEM),               # gamma (1,)
                pl.BlockSpec((1, C, C), lambda b, nt: (b, 0, 0)),    # attention
                pl.BlockSpec((1, C, tn), lambda b, nt: (b, 0, nt)),  # x tile
            ],
            out_specs=pl.BlockSpec((1, C, tn), lambda b, nt: (b, 0, nt)),
        ),
        compiler_params=pltpu.CompilerParams(
            dimension_semantics=("parallel", "parallel"),  # both axes shardable (v7x)
            vmem_limit_bytes=vmem_limit,
        ),
        input_output_aliases={2: 0},  # output fully overwrites x_flat's footprint
    )(gamma, attn, x_flat)

    return out_flat[:, :, :N].reshape(B, C, D, H, W)


def _reference(x, gamma):
    """Pure-JAX reference mirroring the PyTorch forward (f32-accurate einsums)."""
    B, C, D, H, W = x.shape
    q = x.reshape(B, C, -1)
    energy = jnp.einsum("bcn,bkn->bck", q, q, precision=lax.Precision.HIGHEST)
    energy = jnp.max(energy, axis=-1, keepdims=True) - energy
    attn = jax.nn.softmax(energy, axis=-1)
    out = jnp.einsum(
        "bck,bkn->bcn", attn, q, precision=lax.Precision.HIGHEST
    ).reshape(B, C, D, H, W)
    return gamma[0] * out + x


if __name__ == "__main__":
    key = jax.random.PRNGKey(0)
    B, C, D, H, W = 2, 8, 2, 16, 16  # N = 512
    # Modest input magnitudes so operand-rounding differences (MXU vs XLA einsum)
    # are not amplified by the softmax exponent when comparing to the reference.
    x = 0.25 * jax.random.normal(key, (B, C, D, H, W), dtype=jnp.float32)

    gamma0 = jnp.zeros((1,), dtype=jnp.float32)   # module's parameter init
    gamma1 = jnp.array([0.5], dtype=jnp.float32)

    # gamma = 0 (init state): output must equal the input exactly.
    y0 = jax.block_until_ready(channel_attention_module(x, gamma0))
    assert jnp.allclose(y0, x, atol=1e-6)

    ref = _reference(x, gamma1)

    # f32 MXU path, small N tile to exercise multi-tile energy accumulation.
    y_f32 = jax.block_until_ready(
        channel_attention_module(x, gamma1, block_n=128, bf16_value_matmul=False)
    )
    assert jnp.allclose(y_f32, ref, atol=1e-2, rtol=1e-2), float(
        jnp.max(jnp.abs(y_f32 - ref))
    )

    # Default path: bf16 value matmul + bf16 attention storage, f32 energy.
    y_bf16 = jax.block_until_ready(channel_attention_module(x, gamma1))
    assert jnp.allclose(y_bf16, ref, atol=2e-2, rtol=2e-2), float(
        jnp.max(jnp.abs(y_bf16 - ref))
    )

    # Fully-bf16 MXU path (energy matmul in bf16 as well).
    y_fast = jax.block_until_ready(
        channel_attention_module(x, gamma1, bf16_energy_matmul=True)
    )
    assert jnp.allclose(y_fast, ref, atol=5e-2, rtol=5e-2), float(
        jnp.max(jnp.abs(y_fast - ref))
    )

    # Odd spatial size (N = 105, not a multiple of 128) to exercise zero-padding.
    x2 = 0.25 * jax.random.normal(
        jax.random.PRNGKey(1), (1, 4, 3, 5, 7), dtype=jnp.float32
    )
    y2 = jax.block_until_ready(channel_attention_module(x2, gamma1, block_n=128))
    assert jnp.allclose(y2, _reference(x2, gamma1), atol=2e-2, rtol=2e-2)

    print("KERNEL_OK")
</pallas_src>

<mosaic_0001>
module attributes {stable_mosaic.version = 11 : i64} {
  func.func @_energy_softmax_kernel(%arg0: i32, %arg1: i32, %arg2: memref<1x8x512xf32, #tpu.memory_space<vmem>>, %arg3: memref<1x8x8xbf16, #tpu.memory_space<vmem>>, %arg4: memref<8x8xf32, #tpu.memory_space<vmem>>) attributes {dimension_semantics = [#tpu.dimension_semantics<parallel>, #tpu.dimension_semantics<arbitrary>], iteration_bounds = array<i64: 2, 1>, scalar_prefetch = 0 : i64, scratch_operands = 1 : i64, tpu.core_type = #tpu.core_type<tc>, window_params = [{transform_indices = @transform_0, window_bounds = array<i64: 1, 8, 512>}, {transform_indices = @transform_1, window_bounds = array<i64: 1, 8, 8>}]} {
    %c0_i32 = arith.constant 0 : i32
    %0 = arith.cmpi eq, %arg1, %c0_i32 : i32
    %1 = arith.extui %0 : i1 to i32
    %c0_i32_0 = arith.constant 0 : i32
    %2 = arith.cmpi ne, %1, %c0_i32_0 : i32
    scf.if %2 {
      %cst_9 = arith.constant 0.000000e+00 : f32
      %12 = vector.broadcast %cst_9 : f32 to vector<8x8xf32>
      %c0_10 = arith.constant 0 : index
      %c0_11 = arith.constant 0 : index
      %13 = vector.load %arg4[%c0_10, %c0_11] : memref<8x8xf32, #tpu.memory_space<vmem>>, vector<8x8xf32>
      tpu.vector_store %arg4[%c0_10, %c0_11], %12 {strides = array<i32>} : memref<8x8xf32, #tpu.memory_space<vmem>>, vector<8x8xf32>,
    } else {
    }
    %c0 = arith.constant 0 : index
    %c0_1 = arith.constant 0 : index
    %c0_2 = arith.constant 0 : index
    %3 = vector.load %arg2[%c0, %c0_1, %c0_2] : memref<1x8x512xf32, #tpu.memory_space<vmem>>, vector<1x8x512xf32>
    %4 = vector.shape_cast %3 : vector<1x8x512xf32> to vector<8x512xf32>
    %c0_3 = arith.constant 0 : index
    %c0_4 = arith.constant 0 : index
    %5 = vector.load %arg4[%c0_3, %c0_4] : memref<8x8xf32, #tpu.memory_space<vmem>>, vector<8x8xf32>
    %cst = arith.constant dense<0.000000e+00> : vector<8x8xf32>
    %6 = tpu.matmul %4, %4, %cst {dimension_numbers = #tpu.dot_dimension_numbers<[1], [1], [0], [0], [0, 0, 1, 0], [], []>} : vector<8x512xf32>, vector<8x512xf32>, vector<8x8xf32> -> vector<8x8xf32>
    %7 = arith.addf %5, %6 : vector<8x8xf32>
    %c0_5 = arith.constant 0 : index
    %c0_6 = arith.constant 0 : index
    %8 = vector.load %arg4[%c0_5, %c0_6] : memref<8x8xf32, #tpu.memory_space<vmem>>, vector<8x8xf32>
    tpu.vector_store %arg4[%c0_5, %c0_6], %7 {strides = array<i32>} : memref<8x8xf32, #tpu.memory_space<vmem>>, vector<8x8xf32>,
    %c0_i32_7 = arith.constant 0 : i32
    %9 = arith.cmpi eq, %arg1, %c0_i32_7 : i32
    %10 = arith.extui %9 : i1 to i32
    %c0_i32_8 = arith.constant 0 : i32
    %11 = arith.cmpi ne, %10, %c0_i32_8 : i32
    scf.if %11 {
      %c0_9 = arith.constant 0 : index
      %c0_10 = arith.constant 0 : index
      %12 = vector.load %arg4[%c0_9, %c0_10] : memref<8x8xf32, #tpu.memory_space<vmem>>, vector<8x8xf32>
      %cst_11 = arith.constant dense<0x7F800000> : vector<8xf32>
      %13 = vector.multi_reduction <minimumf>, %12, %cst_11 [1] : vector<8x8xf32> to vector<8xf32>
      %14 = vector.shape_cast %13 : vector<8xf32> to vector<8x1xf32>
      %15 = vector.broadcast %14 : vector<8x1xf32> to vector<8x8xf32>
      %16 = arith.subf %15, %12 : vector<8x8xf32>
      %17 = math.exp %16 : vector<8x8xf32>
      %cst_12 = arith.constant dense<0.000000e+00> : vector<8xf32>
      %18 = vector.multi_reduction <add>, %17, %cst_12 [1] : vector<8x8xf32> to vector<8xf32>
      %19 = vector.shape_cast %18 : vector<8xf32> to vector<8x1xf32>
      %20 = tpu.reciprocal %19 {approx = true} : vector<8x1xf32> -> vector<8x1xf32>
      %21 = vector.broadcast %20 : vector<8x1xf32> to vector<8x8xf32>
      %22 = arith.mulf %17, %21 : vector<8x8xf32>
      %23 = arith.truncf %22 : vector<8x8xf32> to vector<8x8xbf16>
      %c0_13 = arith.constant 0 : index
      %c0_14 = arith.constant 0 : index
      %c0_15 = arith.constant 0 : index
      %24 = vector.load %arg3[%c0_13, %c0_14, %c0_15] : memref<1x8x8xbf16, #tpu.memory_space<vmem>>, vector<1x8x8xbf16>
      %25 = vector.shape_cast %24 : vector<1x8x8xbf16> to vector<8x8xbf16>
      %26 = vector.shape_cast %23 : vector<8x8xbf16> to vector<1x8x8xbf16>
      tpu.vector_store %arg3[%c0_13, %c0_14, %c0_15], %26 {strides = array<i32>} : memref<1x8x8xbf16, #tpu.memory_space<vmem>>, vector<1x8x8xbf16>,
    } else {
    }
    return
  }
  func.func @transform_0(%arg0: i32, %arg1: i32) -> (i32, i32, i32) {
    %c0_i32 = arith.constant 0 : i32
    %c0_i32_0 = arith.constant 0 : i32
    return %arg0, %c0_i32, %arg1 : i32, i32, i32
  }
  func.func @transform_1(%arg0: i32, %arg1: i32) -> (i32, i32, i32) {
    %c0_i32 = arith.constant 0 : i32
    %c0_i32_0 = arith.constant 0 : i32
    %c0_i32_1 = arith.constant 0 : i32
    return %arg0, %c0_i32, %c0_i32_0 : i32, i32, i32
  }
}

module attributes {stable_mosaic.version = 11 : i64} {
  func.func @_apply_attention_kernel(%arg0: i32, %arg1: i32, %arg2: memref<1xf32, #tpu.memory_space<smem>>, %arg3: memref<1x8x8xbf16, #tpu.memory_space<vmem>>, %arg4: memref<1x8x512xf32, #tpu.memory_space<vmem>>, %arg5: memref<1x8x512xf32, #tpu.memory_space<vmem>>) attributes {dimension_semantics = [#tpu.dimension_semantics<parallel>, #tpu.dimension_semantics<parallel>], iteration_bounds = array<i64: 2, 1>, scalar_prefetch = 0 : i64, scratch_operands = 0 : i64, tpu.core_type = #tpu.core_type<tc>, window_params = [{transform_indices = @transform_0, window_bounds = array<i64: 1>}, {transform_indices = @transform_1, window_bounds = array<i64: 1, 8, 8>}, {transform_indices = @transform_2, window_bounds = array<i64: 1, 8, 512>}, {transform_indices = @transform_3, window_bounds = array<i64: 1, 8, 512>}]} {
    %c0 = arith.constant 0 : index
    %c0_0 = arith.constant 0 : index
    %c0_1 = arith.constant 0 : index
    %0 = vector.load %arg4[%c0, %c0_0, %c0_1] : memref<1x8x512xf32, #tpu.memory_space<vmem>>, vector<1x8x512xf32>
    %1 = vector.shape_cast %0 : vector<1x8x512xf32> to vector<8x512xf32>
    %c0_2 = arith.constant 0 : index
    %c0_3 = arith.constant 0 : index
    %c0_4 = arith.constant 0 : index
    %2 = vector.load %arg3[%c0_2, %c0_3, %c0_4] : memref<1x8x8xbf16, #tpu.memory_space<vmem>>, vector<1x8x8xbf16>
    %3 = vector.shape_cast %2 : vector<1x8x8xbf16> to vector<8x8xbf16>
    %4 = arith.truncf %1 : vector<8x512xf32> to vector<8x512xbf16>
    %cst = arith.constant dense<0.000000e+00> : vector<8x512xf32>
    %5 = tpu.matmul %3, %4, %cst {dimension_numbers = #tpu.dot_dimension_numbers<[1], [0], [0], [1], [0, 0, 1, 1], [], []>} : vector<8x8xbf16>, vector<8x512xbf16>, vector<8x512xf32> -> vector<8x512xf32>
    %c0_5 = arith.constant 0 : index
    %6 = memref.load %arg2[%c0_5] : memref<1xf32, #tpu.memory_space<smem>>
    %7 = vector.broadcast %6 : f32 to vector<8x512xf32>
    %8 = arith.mulf %7, %5 : vector<8x512xf32>
    %9 = arith.addf %8, %1 : vector<8x512xf32>
    %c0_6 = arith.constant 0 : index
    %c0_7 = arith.constant 0 : index
    %c0_8 = arith.constant 0 : index
    %10 = vector.load %arg5[%c0_6, %c0_7, %c0_8] : memref<1x8x512xf32, #tpu.memory_space<vmem>>, vector<1x8x512xf32>
    %11 = vector.shape_cast %10 : vector<1x8x512xf32> to vector<8x512xf32>
    %12 = vector.shape_cast %9 : vector<8x512xf32> to vector<1x8x512xf32>
    tpu.vector_store %arg5[%c0_6, %c0_7, %c0_8], %12 {strides = array<i32>} : memref<1x8x512xf32, #tpu.memory_space<vmem>>, vector<1x8x512xf32>,
    return
  }
  func.func @transform_0(%arg0: i32, %arg1: i32) -> i32 {
    %c0_i32 = arith.constant 0 : i32
    %c0_i32_0 = arith.constant 0 : i32
    return %c0_i32 : i32
  }
  func.func @transform_1(%arg0: i32, %arg1: i32) -> (i32, i32, i32) {
    %c0_i32 = arith.constant 0 : i32
    %c0_i32_0 = arith.constant 0 : i32
    %c0_i32_1 = arith.constant 0 : i32
    return %arg0, %c0_i32, %c0_i32_0 : i32, i32, i32
  }
  func.func @transform_2(%arg0: i32, %arg1: i32) -> (i32, i32, i32) {
    %c0_i32 = arith.constant 0 : i32
    %c0_i32_0 = arith.constant 0 : i32
    return %arg0, %c0_i32, %arg1 : i32, i32, i32
  }
  func.func @transform_3(%arg0: i32, %arg1: i32) -> (i32, i32, i32) {
    %c0_i32 = arith.constant 0 : i32
    %c0_i32_0 = arith.constant 0 : i32
    return %arg0, %c0_i32, %arg1 : i32, i32, i32
  }
}

</mosaic_0001>

<bundles_post_ra>
// kernel: channel_attention_module.3
= control target key start
LH: loop header
LB: loop body
LE: loop exit
PB: predicated region body
PF: predicated region fallthrough
CT: control target
= control target key end

     0   :  { %s541_s14 = smov 0   ;;  %s543_s15 = smov 0   ;;  %s585_s0 = inlined_call_operand.<no memory space> [shape: f32[1], index: 0, kind: input, shape index: {}]   ;;  %s586_s1 = inlined_call_operand.vmem [shape: bf16[2,8,8], index: 1, kind: input, shape index: {}]   ;;  %s587_s2 = inlined_call_operand.vmem [shape: f32[2,8,512], index: 2, kind: input, shape index: {}, may-alias: {2,3}]   ;;  %s588_s3 = inlined_call_operand.vmem [shape: f32[2,8,512], index: 3, kind: output, shape index: {}, may-alias: {2,3}]  }
   0x1   :  { %8 = sst [smem:[#allocation2]] %s585_s0  ;;  %s545_s16 = smov 0  }
   0x2 LB: > { %s26_s0 = sadd.s32 1, %s511_s15  ;;  %p454_p0 = scmp.ge.s32.totalorder %s515_s16, 1  ;;  %s515_s16 = sphi %s545_s16, %s14_s16   ;;  %s511_s15 = sphi %s543_s15, %s590_s15   ;;  %s507_s14 = sphi %s541_s14, %s589_s14  }
   0x3   : > { %p28_p1 = scmp.ge.s32.totalorder %s26_s0, 2  ;;  %p168_p2 = scmp.lt.s32.totalorder %s515_s16, 3 }
   0x5   : > { %s592_s0 = smov (%p28_p1, %s26_s0), 0  ;;  %p169_p3 = pnand %p454_p0, %p168_p2 }
   0x6   : > { %p204_p4 = scmp.lt.s32.totalorder (!%p169_p3), %s507_s14, 1  ;;  %v517_v0 = vmov (!%p169_p3), 0   ;;  %vm242_vm0 = vcmask (!%p169_p3), 1043456   ;;  %vm238_vm1 = vcmask (!%p169_p3), 64512   ;;  %s337_s25 = sld [smem:[#allocation2]] (!%p169_p3) }
   0x7   : > { %172 = sbr.rel (%p169_p3) target bundleno = 243 (0xf3), region = 32  ;;  %287 = vmatprep.mubr.bf16.mxu0 (!%p169_p3), %v517_v0  ;;  %328 = vmatprep.mubr.bf16.mxu1 (!%p169_p3), %v517_v0 }
   0xc   : > { %v338_v12 = vstv (!%p169_p3), %s337_s25 }
   0xe   : > { %s594_s14 = smov (!%p204_p4, %s507_s14), 1 }
   0xf   : > { %s466_s17 = sshll.u32 %s594_s14, 5  ;;  %s455_s18 = sshll.u32 %s594_s14, 2 }
  0x10   : > { %s216_s21 = scalar_lea.vmem %s587_s2, %s466_s17  ;;  %s207_s24 = scalar_lea.vmem %s586_s1, %s455_s18 }
  0x11   : > { %v230_v1 = vld [vmem:[%s216_s21 + $0x8] sm:$0xff]  ;;  %v232_v2 = vld [vmem:[%s216_s21 + $0x18] sm:$0xff]  ;;  %v229_v3 = vld [vmem:[%s216_s21] sm:$0xff]  ;;  %s226_s28 = scalar_lea.vmem %s588_s3, %s466_s17 }
  0x12   : > { %v235_v4 = vpack.c.bf16 %v230_v1, %v230_v1  ;;  %v237_v5 = vpack.c.bf16 %v232_v2, %v232_v2  ;;  %v234_v6 = vpack.c.bf16 %v229_v3, %v229_v3  ;;  %v231_v7 = vld [vmem:[%s216_s21 + $0x10] sm:$0xff]  ;;  %v233_v11 = vld [vmem:[%s207_s24] sm:$0xf] }
  0x13   : > { %v236_v8 = vpack.c.bf16 %v231_v7, %v231_v7 }
  0x14   : > { %460 = vmatprep.subr.msk.bf16.mxu0 %vm242_vm0, %v235_v4  ;;  %462 = vmatprep.subr.msk.bf16.mxu1 %vm242_vm0, %v237_v5  ;;  %v244_v9 = vsel %vm242_vm0, %v234_v6, 0 }
  0x15   : > { %256 = vmatpush1.bf16.msra.mxu0 %v244_v9  ;;  %v250_v10 = vsel %vm242_vm0, %v236_v8, 0 }
  0x16   : > { %297 = vmatpush1.bf16.msra.mxu1 %v250_v10 }
  0x18   : > { %461 = vmatmul.mubr.msk.bf16.vlgmr.msra.gmra.mrb[0].mxu0 %vm238_vm1, %v233_v11 }
  0x19   : > { %463 = vmatmul.mubr.msk.bf16.vlgmr.msra.gmra.mrb[0].mxu1 %vm238_vm1, %v233_v11 }
  0xeb   : > { %v289_v13 = vpop.f32.mrb[0].mxu0 }
  0xec   : > { %v339_v14 = vmul.f32 %v338_v12, %v289_v13  ;;  %v330_v15 = vpop.f32.mrb[0].mxu1  ;;  %v291_v16 = vpop.f32.mrb[1].mxu0 }
  0xed   : > { %v341_v17 = vmul.f32 %v338_v12, %v330_v15  ;;  %v340_v18 = vmul.f32 %v338_v12, %v291_v16  ;;  %v332_v19 = vpop.f32.mrb[1].mxu1  ;;  %v293_v20 = vpop.f32.mrb[2].mxu0 }
  0xee   : > { %v343_v21 = vadd.f32 %v339_v14, %v229_v3  ;;  %v342_v22 = vmul.f32 %v338_v12, %v332_v19  ;;  %v334_v23 = vpop.f32.mrb[2].mxu1  ;;  %v294_v24 = vpop.f32.mrb[3].mxu0 }
  0xef   : > { %v345_v25 = vadd.f32 %v341_v17, %v231_v7  ;;  %v344_v26 = vadd.f32 %v340_v18, %v230_v1  ;;  %v335_v27 = vpop.f32.mrb[3].mxu1 }
  0xf0   : > { %347 = vst [vmem:[%s226_s28] sm:$0xff] %v343_v21  ;;  %v346_v28 = vadd.f32 %v342_v22, %v232_v2 }
  0xf1   : > { %349 = vst [vmem:[%s226_s28 + $0x10] sm:$0xff] %v345_v25  ;;  %348 = vst [vmem:[%s226_s28 + $0x8] sm:$0xff] %v344_v26 }
  0xf2   : > { %350 = vst [vmem:[%s226_s28 + $0x18] sm:$0xff] %v346_v28 }
  0xf3 PF: > { %s14_s16 = sadd.s32 1, %s515_s16   ;;  %s589_s14 = smov %s511_s15 }
  0xf4   : > { %p11_p5 = scmp.ge.s32.totalorder %s14_s16, 4   ;;  %s590_s15 = smov %s592_s0 }
  0xf6   :  { %13 = sbr.rel (!%p11_p5) target bundleno = 2 (0x2), region = 65 }

// kernel: channel_attention_module.2
= control target key start
LH: loop header
LB: loop body
LE: loop exit
PB: predicated region body
PF: predicated region fallthrough
CT: control target
= control target key end

     0   :  { %s457_s6 = smov 0   ;;  %s459_s7 = smov 0   ;;  %s498_s0 = inlined_call_operand.vmem [shape: f32[2,8,512], index: 0, kind: input, shape index: {}]   ;;  %s499_s1 = inlined_call_operand.vmem [shape: bf16[2,8,8], index: 1, kind: output, shape index: {}]  }
   0x1   :  { %s461_s8 = smov 0  }
   0x2 LB: > { %s23_s9 = sadd.s32 1, %s440_s7  ;;  %p386_p0 = scmp.ge.s32.totalorder %s444_s8, 1  ;;  %s444_s8 = sphi %s461_s8, %s11_s8   ;;  %s440_s7 = sphi %s459_s7, %s501_s7   ;;  %s436_s6 = sphi %s457_s6, %s500_s6  }
   0x3   : > { %p25_p1 = scmp.ge.s32.totalorder %s23_s9, 2  ;;  %p106_p2 = scmp.lt.s32.totalorder %s444_s8, 3 }
   0x5   : > { %s503_s9 = smov (%p25_p1, %s23_s9), 0  ;;  %p107_p3 = pnand %p386_p0, %p106_p2 }
   0x6   : > { %p130_p4 = scmp.lt.s32.totalorder (!%p107_p3), %s436_s6, 1  ;;  %vm147_vm0 = vcmask (!%p107_p3), 64512   ;;  %v446_v4 = vmov (!%p107_p3), 0.0   ;;  %vm313_vm1 = vcmask (!%p107_p3), 60416  }
   0x7   : > { %110 = sbr.rel (%p107_p3) target bundleno = 563 (0x233), region = 24  ;;  %148 = vst.msk [vmem:[#allocation2] sm:$0xff] (!%p107_p3), %vm147_vm0, %v446_v4 }
   0xe   : > { %s505_s6 = smov (!%p130_p4, %s436_s6), 1  ;;  %v153_v6 = vld [vmem:[#allocation2] sm:$0xff] }
   0xf   : > { %s392_s10 = sshll.u32 %s505_s6, 5  ;;  %s389_s14 = sshll.u32 %s505_s6, 2 }
  0x10   : > { %s137_s13 = scalar_lea.vmem %s498_s0, %s392_s10  ;;  %s142_s17 = scalar_lea.vmem %s499_s1, %s389_s14 }
  0x11   : > { %v150_v0 = vld [vmem:[%s137_s13 + $0x8] sm:$0xff]  ;;  %v152_v1 = vld [vmem:[%s137_s13 + $0x18] sm:$0xff]  ;;  %v149_v2 = vld [vmem:[%s137_s13] sm:$0xff] }
  0x12   : > { %154 = vmatprep.subr.mxu0 %v150_v0  ;;  %224 = vmatprep.subr.mxu1 %v152_v1  ;;  %v151_v3 = vld [vmem:[%s137_s13 + $0x10] sm:$0xff] }
  0x13   : > { %155 = vmatpush1.xpose.msra.mxu0 %v149_v2  ;;  %225 = vmatpush1.xpose.msra.mxu1 %v151_v3 }
  0x14   : > { %218 = vmatprep.mubr.f32.mxu0 %v150_v0  ;;  %288 = vmatprep.mubr.f32.mxu1 %v152_v1 }
  0x16   : > { %219 = vmatmul.mubr.f32.vlgmr.msra.gmra.mrb[0].mxu0 %v149_v2  ;;  %289 = vmatmul.mubr.f32.vlgmr.msra.gmra.mrb[0].mxu1 %v151_v3 }
  0xe9   : > { %v220_v5 = vpop.f32.mrb[0].mxu0  ;;  %v290_v7 = vpop.f32.mrb[0].mxu1 }
  0xea   : > { %v291_v8 = vadd.f32 %v290_v7, %v220_v5  ;;  %v222_v9 = vpop.f32.mrb[1].mxu0  ;;  %v292_v10 = vpop.f32.mrb[1].mxu1 }
  0xec   : > { %v294_v11 = vadd.f32 %v291_v8, %v153_v6 }
  0xee   : > { %296 = vst.msk [vmem:[#allocation2] sm:$0xff] %vm147_vm0, %v294_v11 }
  0xf5   : > { %v300_v12 = vld [vmem:[#allocation2] sm:$0xff] }
  0xf6   : > { %v301_v13 = vsel %vm147_vm0, %v300_v12, inf }
  0xf7   : > { %302 = vmin.xlane.f32.xlu0 %v301_v13 }
 0x184   : > { %v303_v14 = vpop.xlane.xlu0 %302 }
 0x185   : > { %v304_v15 = vsub.f32 %v303_v14, %v300_v12 }
 0x187   : > { %v305_v16 = vmul.f32 1.442695, %v304_v15 }
 0x189   : > { %418 = vpow2.f32 %v305_v16 }
 0x193   : > { %v419_v17 = vpop.eup %418 }
 0x194   : > { %v307_v18 = vsel %vm147_vm0, %v419_v17, 0.0 }
 0x195   : > { %308 = vadd.xlane.f32.xlu0 %v307_v18 }
 0x222   : > { %v309_v19 = vpop.xlane.xlu0 %308 }
 0x223   : > { %420 = vrcp.f32 %v309_v19 }
 0x22d   : > { %v421_v20 = vpop.eup %420 }
 0x22e   : > { %v311_v21 = vmul.f32 %v421_v20, %v419_v17 }
 0x230   : > { %v312_v22 = vpack.c.bf16 %v311_v21, %v311_v21 }
 0x232   : > { %314 = vst.msk [vmem:[%s142_s17] sm:$0xf] %vm313_vm1, %v312_v22 }
 0x233 PF: > { %s11_s8 = sadd.s32 1, %s444_s8   ;;  %s500_s6 = smov %s440_s7 }
 0x234   : > { %p8_p5 = scmp.ge.s32.totalorder %s11_s8, 4   ;;  %s501_s7 = smov %s503_s9 }
 0x236   :  { %10 = sbr.rel (!%p8_p5) target bundleno = 2 (0x2), region = 62 }

</bundles_post_ra>
